<compile_context>
chip_gen: v7x
topology: tpu7x:2x2x1
jax: 0.10.0
libtpu: 0.0.40
codegen_flags: <defaults>
</compile_context>

<pallas_src>
import numpy as np
import jax
import jax.numpy as jnp
from jax.experimental import pallas as pl
from jax.experimental.pallas import tpu as pltpu

MAX_TILE = 2048  # k-points per grid step (multiple of 128); ~1 MiB output block


# ----------------------------------------------------------------------------- kernel
def mg_bulk_kernel(params_sm, kin_ref, consts_ref, out_ref):
    # lattice vectors from SMEM scalars
    a1x = params_sm[0]
    a1y = params_sm[1]
    a2x = params_sm[2]
    a2y = params_sm[3]

    kx = kin_ref[0:1, :]                  # (1, TILE)  lane-dense row of kx
    ky = kin_ref[1:2, :]                  # (1, TILE)
    phi1 = kx * a1x + ky * a1y            # Bloch phase k . a1
    phi2 = kx * a2x + ky * a2y            # Bloch phase k . a2
    c1 = jnp.cos(phi1)
    s1 = jnp.sin(phi1)
    c2 = jnp.cos(phi2)
    s2 = jnp.sin(phi2)

    cm = consts_ref[...]                  # (128, 128) resident constant slab
    cvec = cm[:, 0:1]                     # (128, 1)  [Re(C) | Im(C)]
    b1c = cm[:, 1:2]                      # cos(phi1) coefficient (Re half)
    b2c = cm[:, 2:3]                      # cos(phi2) coefficient (Re half)
    b1s = cm[:, 3:4]                      # sin(phi1) coefficient (Im half)
    b2s = cm[:, 4:5]                      # sin(phi2) coefficient (Im half)

    # rank-1 broadcasts: (128,1) x (1,TILE) -> (128,TILE); single unmasked store
    out_ref[...] = cvec + b1c * c1 + b2c * c2 + b1s * s1 + b2s * s2


def build_h_batch(kpts_np, params_np, consts_np, max_tile=MAX_TILE):
    """Run the Pallas kernel over all k-points; returns complex H of shape (N, 8, 8)."""
    n = kpts_np.shape[0]
    n_pad = max(128, ((n + 127) // 128) * 128)
    tile = min(max_tile, n_pad)                      # multiple of 128
    n_pad = ((n_pad + tile - 1) // tile) * tile      # multiple of tile

    kin = np.zeros((8, n_pad), np.float32)
    kin[0, :n] = kpts_np[:, 0].astype(np.float32)
    kin[1, :n] = kpts_np[:, 1].astype(np.float32)

    out = pl.pallas_call(
        mg_bulk_kernel,
        out_shape=jax.ShapeDtypeStruct((128, n_pad), jnp.float32),
        grid=(n_pad // tile,),
        in_specs=[
            pl.BlockSpec(memory_space=pltpu.MemorySpace.SMEM),   # a1/a2 components
            pl.BlockSpec((8, tile), lambda i: (0, i)),           # k-point tile (lane-dense)
            pl.BlockSpec((128, 128), lambda i: (0, 0)),          # constant slab (resident)
        ],
        out_specs=pl.BlockSpec((128, tile), lambda i: (0, i)),   # lane-dense fused re/im output
        compiler_params=pltpu.CompilerParams(dimension_semantics=("parallel",)),
    )(jnp.asarray(params_np, jnp.float32),
      jnp.asarray(kin),
      jnp.asarray(consts_np, jnp.float32))

    out = np.asarray(jax.block_until_ready(out))[:, :n]          # (128, n)
    hre = out[:64, :].T.reshape(n, 8, 8)
    him = out[64:128, :].T.reshape(n, 8, 8)
    return hre + 1j * him


# ----------------------------------------------------------------------------- glue
def lattice_constants(l, alpha):
    s3 = np.sqrt(3.0)
    x = np.array([1.0, 0.0])
    y = np.array([0.0, 1.0])
    a1 = s3 * l * x
    a2 = (s3 * x + 3.0 * y) * l / 2.0
    r1 = (a1 + a2) / 3.0
    r2 = (-2.0 * a1 + a2) / 3.0
    r3 = (a1 - 2.0 * a2) / 3.0
    r1h = r1 / np.linalg.norm(r1)
    r2h = r2 / np.linalg.norm(r2)
    r3h = r3 / np.linalg.norm(r3)
    b1 = 2.0 * np.pi / s3 / l * (x - y / s3)
    b2 = 4.0 * np.pi / 3.0 / l * y
    G = np.zeros(2)
    K = (b1 / 2.0 + b2 / 4.0) / np.cos(np.pi / 6.0) ** 2
    M = b1 / 2.0
    GK, KM, MG = K - G, M - K, G - M
    return dict(
        xw=np.pi / s3 * 2.0 / l, yw=np.pi / 3.0 * 4.0 / l,
        a1=a1, a2=a2,
        r11=np.outer(r1h, r1h), r22=np.outer(r2h, r2h), r33=np.outer(r3h, r3h),
        GK=GK, KM=KM, MG=MG,
        gk=GK / np.linalg.norm(GK), km=KM / np.linalg.norm(KM), mg=MG / np.linalg.norm(MG),
    )


def bulk_constants(lat, w0, Omega):
    """Pack the constant 8x8 matrices of H(k) into one aligned (128,128) slab."""
    # sigma_y (the reference code uses an undefined global `σ.y`; Pauli-y assumed)
    sy = np.array([[0.0, -1.0j], [1.0j, 0.0]])
    r11, r22, r33 = lat["r11"], lat["r22"], lat["r33"]
    R = r11 + r22 + r33
    w2 = w0 ** 2
    C = np.zeros((8, 8), complex)
    C[0:4, 4:8] = w2 * np.eye(4)          # M^{-1} swaps halves: top half of H = [0, w0^2 I]
    C[4:6, 0:2] = w2 * R
    C[6:8, 2:4] = w2 * R
    C[4:6, 2:4] = -w2 * r11
    C[6:8, 0:2] = -w2 * r11
    C[4:6, 4:6] = w2 * (-2.0 * Omega) * sy
    C[6:8, 6:8] = w2 * (-2.0 * Omega) * sy
    B1 = np.zeros((8, 8)); B1c = np.zeros((8, 8))
    B2 = np.zeros((8, 8)); B2c = np.zeros((8, 8))
    B1[6:8, 0:2] = -w2 * r22              # coeff of K1
    B1c[4:6, 2:4] = -w2 * r22             # coeff of conj(K1)
    B2[6:8, 0:2] = -w2 * r33              # coeff of K2
    B2c[4:6, 2:4] = -w2 * r33             # coeff of conj(K2)

    z64 = np.zeros(64)
    consts = np.zeros((128, 128), np.float32)
    consts[:, 0] = np.concatenate([C.real.ravel(), C.imag.ravel()])
    consts[:, 1] = np.concatenate([(B1 + B1c).ravel(), z64])   # * cos(phi1)
    consts[:, 2] = np.concatenate([(B2 + B2c).ravel(), z64])   # * cos(phi2)
    consts[:, 3] = np.concatenate([z64, (B1 - B1c).ravel()])   # * sin(phi1)
    consts[:, 4] = np.concatenate([z64, (B2 - B2c).ravel()])   # * sin(phi2)
    return consts


def bulk_h_reference(lat, w0, Omega, kx, ky):
    """Direct numpy transcription of BulkH.forward (perturbation=False) for checking."""
    sy = np.array([[0.0, -1.0j], [1.0j, 0.0]])
    r11, r22, r33 = lat["r11"], lat["r22"], lat["r33"]
    K1 = np.exp(1j * (kx * lat["a1"][0] + ky * lat["a1"][1]))
    K2 = np.exp(1j * (kx * lat["a2"][0] + ky * lat["a2"][1]))
    R = r11 + r22 + r33
    L11 = np.block([[R, -(r11 + np.conj(K1) * r22 + np.conj(K2) * r33)],
                    [-(r11 + K1 * r22 + K2 * r33), R]])
    L12 = np.block([[-2.0 * Omega * sy, np.zeros((2, 2))],
                    [np.zeros((2, 2)), -2.0 * Omega * sy]])
    L = w0 ** 2 * np.block([[L11, L12], [np.zeros((4, 4)), np.eye(4)]])
    M = np.block([[np.zeros((4, 4)), np.eye(4)], [np.eye(4), np.zeros((4, 4))]]).astype(complex)
    return np.linalg.inv(M) @ L


def forward_points(kxs, kys, params, consts, lat, w0, Omega, check_samples=4):
    kpts = np.stack([np.asarray(kxs, np.float64), np.asarray(kys, np.float64)], axis=1)
    H = build_h_batch(kpts, params, consts)                      # Pallas hot path

    if check_samples:
        # subsampled verification of the kernel output against a direct transcription
        idx = np.unique(np.linspace(0, H.shape[0] - 1, min(check_samples, H.shape[0])).astype(int))
        for i in idx:
            href = bulk_h_reference(lat, w0, Omega,
                                    float(np.float32(kpts[i, 0])), float(np.float32(kpts[i, 1])))
            assert np.allclose(H[i], href, atol=1e-4), "kernel H mismatch vs reference"

    # TODO(synk): torch.linalg.eig of a general non-Hermitian complex matrix has no
    # Pallas/TPU equivalent; computed on host with one batched numpy eig call.
    w, v = np.linalg.eig(H.astype(np.complex128))                # (n,8), (n,8,8)
    idcs = np.argsort(w.real, axis=1)
    evals = np.take_along_axis(w, idcs, axis=1)
    # row-indexing of the eigenvector matrix, faithfully reproducing the reference code
    evecs = np.take_along_axis(v, idcs[:, :, None], axis=1)
    return evals, evecs


# ----------------------------------------------------------------------------- main
if __name__ == "__main__":
    # Module forward takes no tensor input (k-grids are derived from hyper-params);
    # key is created per instructions but the inputs themselves are deterministic.
    key = jax.random.PRNGKey(0)
    del key

    kappa, alpha, m, l = 1.0, 0.8, 1.0, 1.0
    Omega, precision = 0.1, 1.0          # small grid for the demo
    perturbation = False                  # TODO(synk): perturbation=True (4x4) branch not implemented
    # TODO(synk): Mode.Ribbon is a stub in the reference (RibbonH.forward returns None).
    w0 = np.sqrt(kappa / m)

    lat = lattice_constants(l, alpha)
    params = np.array([lat["a1"][0], lat["a1"][1], lat["a2"][0], lat["a2"][1]], np.float32)
    consts = bulk_constants(lat, w0, Omega)

    # full Brillouin-zone grid (forward(gkmg=False))
    kxs = np.arange(-lat["xw"], lat["xw"], precision)
    kys = np.arange(-lat["yw"], lat["yw"], precision)
    KX, KY = np.meshgrid(kxs, kys)                    # (len(kys), len(kxs))
    ev_flat, evec_flat = forward_points(KX.ravel(), KY.ravel(), params, consts, lat, w0, Omega)
    evals = ev_flat.reshape(len(kys), len(kxs), 8)
    evecs = evec_flat.reshape(len(kys), len(kxs), 8, 8)
    evals_real = evals.real                           # returned as in the torch forward

    # high-symmetry path Gamma-K-M-Gamma (forward(gkmg=True))
    num_gk = int(np.linalg.norm(lat["GK"]) / precision)
    num_km = int(np.linalg.norm(lat["KM"]) / precision)
    num_mg = int(np.linalg.norm(lat["MG"]) / precision) + 1
    kxs_g = np.hstack([[lat["gk"][0] * precision * i for i in range(num_gk)],
                       [lat["km"][0] * precision * i + lat["GK"][0] for i in range(num_km)],
                       [lat["mg"][0] * precision * i + lat["GK"][0] + lat["KM"][0] for i in range(num_mg)]])
    kys_g = np.hstack([[lat["gk"][1] * precision * i for i in range(num_gk)],
                       [lat["km"][1] * precision * i + lat["GK"][1] for i in range(num_km)],
                       [lat["mg"][1] * precision * i + lat["GK"][1] + lat["KM"][1] for i in range(num_mg)]])
    evals_gkmg, evecs_gkmg = forward_points(kxs_g, kys_g, params, consts, lat, w0, Omega)

    assert evals_real.shape == (len(kys), len(kxs), 8)
    assert evecs.shape == (len(kys), len(kxs), 8, 8)
    assert evals_gkmg.shape == (len(kxs_g), 8)
    assert np.isfinite(evals_real).all()
    print("KERNEL_OK")
</pallas_src>

<mosaic_0001>
module attributes {stable_mosaic.version = 11 : i64} {
  func.func @mg_bulk_kernel(%arg0: i32, %arg1: memref<4xf32, #tpu.memory_space<smem>>, %arg2: memref<8x128xf32, #tpu.memory_space<vmem>>, %arg3: memref<128x128xf32, #tpu.memory_space<vmem>>, %arg4: memref<128x128xf32, #tpu.memory_space<vmem>>) attributes {dimension_semantics = [#tpu.dimension_semantics<parallel>], iteration_bounds = array<i64: 1>, scalar_prefetch = 0 : i64, scratch_operands = 0 : i64, tpu.core_type = #tpu.core_type<tc>, window_params = [{transform_indices = @transform_0, window_bounds = array<i64: 4>}, {transform_indices = @transform_1, window_bounds = array<i64: 8, 128>}, {pipeline_mode = #tpu.pipeline_mode<synchronous>, transform_indices = @transform_2, window_bounds = array<i64: 128, 128>}, {transform_indices = @transform_3, window_bounds = array<i64: 128, 128>}]} {
    %c0 = arith.constant 0 : index
    %0 = memref.load %arg1[%c0] : memref<4xf32, #tpu.memory_space<smem>>
    %c1 = arith.constant 1 : index
    %1 = memref.load %arg1[%c1] : memref<4xf32, #tpu.memory_space<smem>>
    %c2 = arith.constant 2 : index
    %2 = memref.load %arg1[%c2] : memref<4xf32, #tpu.memory_space<smem>>
    %c3 = arith.constant 3 : index
    %3 = memref.load %arg1[%c3] : memref<4xf32, #tpu.memory_space<smem>>
    %c0_0 = arith.constant 0 : index
    %c0_1 = arith.constant 0 : index
    %4 = vector.load %arg2[%c0_0, %c0_1] : memref<8x128xf32, #tpu.memory_space<vmem>>, vector<1x128xf32>
    %c1_2 = arith.constant 1 : index
    %c0_3 = arith.constant 0 : index
    %5 = vector.load %arg2[%c1_2, %c0_3] : memref<8x128xf32, #tpu.memory_space<vmem>>, vector<1x128xf32>
    %6 = vector.broadcast %0 : f32 to vector<1x128xf32>
    %7 = arith.mulf %4, %6 : vector<1x128xf32>
    %8 = vector.broadcast %1 : f32 to vector<1x128xf32>
    %9 = arith.mulf %5, %8 : vector<1x128xf32>
    %10 = arith.addf %7, %9 : vector<1x128xf32>
    %11 = vector.broadcast %2 : f32 to vector<1x128xf32>
    %12 = arith.mulf %4, %11 : vector<1x128xf32>
    %13 = vector.broadcast %3 : f32 to vector<1x128xf32>
    %14 = arith.mulf %5, %13 : vector<1x128xf32>
    %15 = arith.addf %12, %14 : vector<1x128xf32>
    %16 = math.cos %10 : vector<1x128xf32>
    %17 = math.sin %10 : vector<1x128xf32>
    %18 = math.cos %15 : vector<1x128xf32>
    %19 = math.sin %15 : vector<1x128xf32>
    %c0_4 = arith.constant 0 : index
    %c0_5 = arith.constant 0 : index
    %20 = vector.load %arg3[%c0_4, %c0_5] : memref<128x128xf32, #tpu.memory_space<vmem>>, vector<128x128xf32>
    %21 = vector.extract_strided_slice %20 {offsets = [0, 0], sizes = [128, 1], strides = [1, 1]} : vector<128x128xf32> to vector<128x1xf32>
    %22 = vector.extract_strided_slice %20 {offsets = [0, 1], sizes = [128, 1], strides = [1, 1]} : vector<128x128xf32> to vector<128x1xf32>
    %23 = vector.extract_strided_slice %20 {offsets = [0, 2], sizes = [128, 1], strides = [1, 1]} : vector<128x128xf32> to vector<128x1xf32>
    %24 = vector.extract_strided_slice %20 {offsets = [0, 3], sizes = [128, 1], strides = [1, 1]} : vector<128x128xf32> to vector<128x1xf32>
    %25 = vector.extract_strided_slice %20 {offsets = [0, 4], sizes = [128, 1], strides = [1, 1]} : vector<128x128xf32> to vector<128x1xf32>
    %26 = vector.broadcast %22 : vector<128x1xf32> to vector<128x128xf32>
    %27 = vector.broadcast %16 : vector<1x128xf32> to vector<128x128xf32>
    %28 = arith.mulf %26, %27 : vector<128x128xf32>
    %29 = vector.broadcast %21 : vector<128x1xf32> to vector<128x128xf32>
    %30 = arith.addf %29, %28 : vector<128x128xf32>
    %31 = vector.broadcast %23 : vector<128x1xf32> to vector<128x128xf32>
    %32 = vector.broadcast %18 : vector<1x128xf32> to vector<128x128xf32>
    %33 = arith.mulf %31, %32 : vector<128x128xf32>
    %34 = arith.addf %30, %33 : vector<128x128xf32>
    %35 = vector.broadcast %24 : vector<128x1xf32> to vector<128x128xf32>
    %36 = vector.broadcast %17 : vector<1x128xf32> to vector<128x128xf32>
    %37 = arith.mulf %35, %36 : vector<128x128xf32>
    %38 = arith.addf %34, %37 : vector<128x128xf32>
    %39 = vector.broadcast %25 : vector<128x1xf32> to vector<128x128xf32>
    %40 = vector.broadcast %19 : vector<1x128xf32> to vector<128x128xf32>
    %41 = arith.mulf %39, %40 : vector<128x128xf32>
    %42 = arith.addf %38, %41 : vector<128x128xf32>
    %c0_6 = arith.constant 0 : index
    %c0_7 = arith.constant 0 : index
    %43 = vector.load %arg4[%c0_6, %c0_7] : memref<128x128xf32, #tpu.memory_space<vmem>>, vector<128x128xf32>
    tpu.vector_store %arg4[%c0_6, %c0_7], %42 {strides = array<i32>} : memref<128x128xf32, #tpu.memory_space<vmem>>, vector<128x128xf32>,
    return
  }
  func.func @transform_0(%arg0: i32) -> i32 {
    %c0_i32 = arith.constant 0 : i32
    %c0_i32_0 = arith.constant 0 : i32
    return %c0_i32 : i32
  }
  func.func @transform_1(%arg0: i32) -> (i32, i32) {
    %c0_i32 = arith.constant 0 : i32
    %c0_i32_0 = arith.constant 0 : i32
    return %c0_i32, %arg0 : i32, i32
  }
  func.func @transform_2(%arg0: i32) -> (i32, i32) {
    %c0_i32 = arith.constant 0 : i32
    %c0_i32_0 = arith.constant 0 : i32
    %c0_i32_1 = arith.constant 0 : i32
    return %c0_i32, %c0_i32_0 : i32, i32
  }
  func.func @transform_3(%arg0: i32) -> (i32, i32) {
    %c0_i32 = arith.constant 0 : i32
    %c0_i32_0 = arith.constant 0 : i32
    return %c0_i32, %arg0 : i32, i32
  }
}

</mosaic_0001>

<bundles_post_ra>
// kernel: tpu_custom_call.1
= control target key start
LH: loop header
LB: loop body
LE: loop exit
PB: predicated region body
PF: predicated region fallthrough
CT: control target
= control target key end

     0   :  { %8 = vsyncpa [#allocation5], 0  ;;  %s1714_s0 = inlined_call_operand.hbm [shape: f32[4], index: 0, kind: input, shape index: {}]   ;;  %s1715_s1 = inlined_call_operand.hbm [shape: f32[8,128], index: 1, kind: input, shape index: {}]   ;;  %s1716_s2 = inlined_call_operand.hbm [shape: f32[128,128], index: 2, kind: input, shape index: {}]   ;;  %s1717_s3 = inlined_call_operand.hbm [shape: f32[128,128], index: 3, kind: output, shape index: {}]  }
   0x1   :  { %9 = vsyncpa [#allocation3], 0 }
   0x2   :  { %10 = vsyncpa [#allocation8], 0 }
   0x3   :  { %11 = vsyncpa [#allocation4], 0  ;;  %s1075_s14 = scalar_lea.hbm %s1714_s0, 16 }
   0x4   :  { %p1076_p0 = scmp.ne.s32.totalorder %s1714_s0, %s1075_s14  ;;  %p1079_p1 = scmp.lt.u32.totalorder %s1075_s14, %s1714_s0 }
   0x6   :  { %p1081_p2 = pnand %p1079_p1, %p1076_p0 }
   0x8   :  { %1084 = shalt.err (!%p1081_p2)
}
   0x9   :  { %s1159_s19 = smov [#allocation2]   ;;  %s1160_s22 = smov [#allocation6]  }
   0xa   :  { %19 = dma.hbm_to_smem %s1714_s0, 16, %s1159_s19, [#allocation5]  }
   0xb   :  { %s26_s23 = sshll.u32 %s1160_s22, 4  ;;  %s1161_s24 = smov [#allocation7]   ;;  %s27_s23 = int_to_ptr.vmem [resolvable:$true] %s26_s23 }
   0xc   :  { %s35_s25 = sshll.u32 %s1161_s24, 4  ;;  %s1085_s28 = scalar_lea.hbm %s1715_s1, 128  ;;  %s36_s25 = int_to_ptr.vmem [resolvable:$true] %s35_s25 }
   0xd   :  { %p1086_p3 = scmp.ne.s32.totalorder %s1715_s1, %s1085_s28  ;;  %p1089_p4 = scmp.lt.u32.totalorder %s1085_s28, %s1715_s1 }
   0xf   :  { %p1091_p5 = pnand %p1089_p4, %p1086_p3 }
  0x11   :  { %1094 = shalt.err (!%p1091_p5)
}
  0x12   :  { %s1095_s0 = scalar_lea.vmem %s27_s23, 128  ;;  %p1100_p7 = scmp.lt.s32.totalorder %s27_s23, %s27_s23 }
  0x13   :  { %p1096_p6 = scmp.ne.s32.totalorder %s27_s23, %s1095_s0  ;;  %p1101_p8 = scmp.lt.s32.totalorder %s1095_s0, %s1095_s0 }
  0x15   :  { %p1102_p9 = por %p1101_p8, %p1100_p7 }
  0x17   :  { %p1103_p10 = pnand %p1102_p9, %p1096_p6 }
  0x19   :  { %1106 = shalt.err (!%p1103_p10)
}
  0x1a   :  { %29 = dma.hbm_to_vmem [thread:$0]  %s1715_s1, 128, %s27_s23, [#allocation3]  }
  0x1b   :  { %s1107_s10 = scalar_lea.hbm %s1716_s2, 2048 }
  0x1c   :  { %p1108_p11 = scmp.ne.s32.totalorder %s1716_s2, %s1107_s10  ;;  %p1111_p12 = scmp.lt.u32.totalorder %s1107_s10, %s1716_s2 }
  0x1e   :  { %p1113_p13 = pnand %p1111_p12, %p1108_p11 }
  0x20   :  { %1116 = shalt.err (!%p1113_p13)
}
  0x21   :  { %s1117_s15 = scalar_lea.vmem %s36_s25, 2048  ;;  %p1122_p1 = scmp.lt.s32.totalorder %s36_s25, %s36_s25 }
  0x22   :  { %p1118_p0 = scmp.ne.s32.totalorder %s36_s25, %s1117_s15  ;;  %p1123_p2 = scmp.lt.s32.totalorder %s1117_s15, %s1117_s15 }
  0x24   :  { %p1124_p3 = por %p1123_p2, %p1122_p1 }
  0x26   :  { %p1125_p4 = pnand %p1124_p3, %p1118_p0 }
  0x28   :  { %1128 = shalt.err (!%p1125_p4)
}
  0x29   :  { %s1162_s1 = smov 128   ;;  %s1163_s16 = smov 8  }
  0x2a   :  { %41 = dma.hbm_to_vmem [thread:$0]  %s1716_s2, 2048, %s36_s25, [#allocation8], %s1162_s1, %s1162_s1, %s1163_s16  }
  0x2b   :  { %1151 = dma.done.wait [#allocation5], 16  }
  0x2c   :  { %1152 = vsyncadd [#allocation5], 4294967280 }
  0x2d   :  { %1153 = dma.done.wait [#allocation3], 128  }
  0x2e   :  { %1154 = vsyncadd [#allocation3], 4294967168 }
  0x2f   :  { %1155 = dma.done.wait [#allocation8], 2048  }
  0x30   :  { %1156 = vsyncadd [#allocation8], 4294965248 }
  0x31   :  { %51 = sfence }
  0x32   :  { %v1235_v0 = vld [vmem:[#allocation7 + $0x10] sm:$0xff]  ;;  %v1237_v1 = vld [vmem:[#allocation7] sm:$0xff]  ;;  %v1164_v2 = vmov 1   ;;  %s52_s19 = sld [smem:[#allocation2]]  ;;  %s1013_s2 = sld [smem:[#allocation2 + $0x1]]  ;;  %v1241_v3 = vld [vmem:[#allocation7 + $0x18] sm:$0xff] }
  0x33   :  { %1058 = vset.pattern.permute.xlu1 %v1164_v2  ;;  %1057 = vset.pattern.permute.xlu0 %v1164_v2  ;;  %v1243_v4 = vld [vmem:[#allocation7 + $0x8] sm:$0xff]  ;;  %v56_v5 = vld [vmem:[#allocation6] sm:$0x1]  ;;  %v57_v6 = vld [vmem:[#allocation6 + $0x1] sm:$0x1]  ;;  %s1014_s20 = sld [smem:[#allocation2 + $0x2]] }
  0x34   :  { %510 = vperm.xlu1 %1058, %v1235_v0   ;;  %500 = vperm.xlu0 %1057, %v1237_v1   ;;  %v1247_v7 = vld [vmem:[#allocation7 + $0x28] sm:$0xff]  ;;  %v1249_v8 = vld [vmem:[#allocation7 + $0x20] sm:$0xff]  ;;  %s1015_s21 = sld [smem:[#allocation2 + $0x3]]  ;;  %v1253_v13 = vld [vmem:[#allocation7 + $0x38] sm:$0xff]  ;;  %v1165_v39 = vmov 683565275  }
  0x35   :  { %v1255_v14 = vld [vmem:[#allocation7 + $0x30] sm:$0xff]  ;;  %v1263_v20 = vld [vmem:[#allocation7 + $0x48] sm:$0xff]  ;;  %v1265_v21 = vld [vmem:[#allocation7 + $0x40] sm:$0xff]  ;;  %v1166_v41 = vmov 2475754826   ;;  %s1175_s22 = smov [#allocation9]  }
  0x36   :  { %v1271_v27 = vld [vmem:[#allocation7 + $0x58] sm:$0xff]  ;;  %v1273_v28 = vld [vmem:[#allocation7 + $0x50] sm:$0xff]  ;;  %v1277_v31 = vld [vmem:[#allocation7 + $0x68] sm:$0xff]  ;;  %v1167_v43 = vmov 2131351028   ;;  %s999_s23 = sshll.u32 %s1175_s22, 4  ;;  %s1000_s23 = int_to_ptr.vmem [resolvable:$true] %s999_s23 }
  0x37   :  { %v1281_v34 = vld [vmem:[#allocation7 + $0x60] sm:$0xff]  ;;  %v1168_v45 = vmov 2102212464   ;;  %v1169_v47 = vmov 920167782   ;;  %v1291_v50 = vld [vmem:[#allocation7 + $0x78] sm:$0xff]  ;;  %p1134_p6 = scmp.lt.s32.totalorder %s1000_s23, %s1000_s23 }
  0x38   :  { %515 = vperm.xlu1 %1058, %v1241_v3   ;;  %505 = vperm.xlu0 %1057, %v1243_v4   ;;  %v58_v9 = vstv %s52_s19  ;;  %v60_v11 = vstv %s1013_s2  ;;  %v1293_v51 = vld [vmem:[#allocation7 + $0x70] sm:$0xff]  ;;  %v1170_v57 = vmov 1326507024   ;;  %s1129_s24 = scalar_lea.vmem %s1000_s23, 2048 }
  0x39   :  { %v59_v10 = vmul.f32 %v58_v9, %v56_v5  ;;  %v61_v12 = vmul.f32 %v60_v11, %v57_v6  ;;  %v63_v18 = vstv %s1014_s20  ;;  %p1130_p5 = scmp.ne.s32.totalorder %s1000_s23, %s1129_s24  ;;  %p1135_p7 = scmp.lt.s32.totalorder %s1129_s24, %s1129_s24 }
  0x3a   :  { %v65_v19 = vstv %s1015_s21  ;;  %v64_v23 = vmul.f32 %v63_v18, %v56_v5 }
  0x3b   :  { %v1257_v15 = vadd.f32 %v61_v12, %v59_v10  ;;  %v66_v24 = vmul.f32 %v65_v19, %v57_v6  ;;  %p1136_p8 = por %p1135_p7, %p1134_p6 }
  0x3c   :  { %525 = vperm.xlu1 %1058, %v1247_v7   ;;  %520 = vperm.xlu0 %1057, %v1249_v8  }
  0x3d   :  { %v71_v16 = vand.u32 2139095040, %v1257_v15  ;;  %v68_v17 = vand.u32 2147483647, %v1257_v15  ;;  %v1275_v30 = vadd.f32 %v66_v24, %v64_v23  ;;  %vm70_vm13 = vcmp.lt.s32.totalorder %v1257_v15, 0  ;;  %p1137_p9 = pnand %p1136_p8, %p1130_p5 }
  0x3f   :  { %v72_v22 = vshrl.u32 %v71_v16, 23  ;;  %v75_v26 = vand.u32 8388607, %v68_v17  ;;  %v278_v37 = vand.u32 2139095040, %v1275_v30  ;;  %vm1415_vm14 = vcmp.le.f32.partialorder %v68_v17, 0.7853982 }
  0x40   :  { %535 = vperm.xlu1 %1058, %v1253_v13   ;;  %530 = vperm.xlu0 %1057, %v1255_v14  }
  0x41   :  { %v1016_v25 = vadd.s32 4294967169, %v72_v22  ;;  %v76_v32 = vor.u32 8388608, %v75_v26  ;;  %v279_v59 = vshrl.u32 %v278_v37, 23  ;;  %v1171_v22 = vmov 0  }
  0x43   :  { %v78_v29 = vadd.s32 1, %v1016_v25  ;;  %v116_v49 = vshll.u32 %v76_v32, 8  ;;  %v1024_v26 = vadd.s32 4294967169, %v279_v59  ;;  %v275_v59 = vand.u32 2147483647, %v1275_v30 }
  0x44   :  { %545 = vperm.xlu1 %1058, %v1263_v20   ;;  %540 = vperm.xlu0 %1057, %v1265_v21  }
  0x45   :  { %vm79_vm0 = vcmp.gt.s32.totalorder %v78_v29, 0 }
  0x46   :  { %v80_v33 = vsel %vm79_vm0, %v78_v29, 0 }
  0x47   :  { %v82_v35 = vand.u32 31, %v80_v33  ;;  %v81_v36 = vshrl.u32 %v80_v33, 5 }
  0x48   :  { %555 = vperm.xlu1 %1058, %v1271_v27   ;;  %550 = vperm.xlu0 %1057, %v1273_v28  }
  0x49   :  { %v83_v38 = vsub.s32 32, %v82_v35  ;;  %v85_v40 = vshll.u32 %v1165_v39, %v82_v35  ;;  %v88_v42 = vshll.u32 %v1166_v41, %v82_v35  ;;  %v91_v44 = vshll.u32 %v1167_v43, %v82_v35 }
  0x4a   :  { %v94_v46 = vshll.u32 %v1168_v45, %v82_v35  ;;  %v97_v48 = vshll.u32 %v1169_v47, %v82_v35  ;;  %vm100_vm1 = vcmp.lt.s32.totalorder %v81_v36, 1  ;;  %vm103_vm2 = vcmp.lt.s32.totalorder %v81_v36, 4 }
  0x4b   :  { %v84_v52 = vshrl.u32 %v1165_v39, %v83_v38  ;;  %v86_v53 = vshrl.u32 %v1166_v41, %v83_v38  ;;  %v89_v54 = vshrl.u32 %v1167_v43, %v83_v38  ;;  %v92_v55 = vshrl.u32 %v1168_v45, %v83_v38 }
  0x4c   :  { %565 = vperm.xlu1 %1058, %v1277_v31   ;;  %560 = vperm.xlu0 %1057, %v1281_v34   ;;  %v95_v56 = vshrl.u32 %v1169_v47, %v83_v38  ;;  %v98_v58 = vshrl.u32 %v1170_v57, %v83_v38  ;;  %vm101_vm3 = vcmp.lt.s32.totalorder %v81_v36, 2  ;;  %vm102_vm4 = vcmp.lt.s32.totalorder %v81_v36, 3 }
  0x4d   :  { %v87_v60 = vor.u32 %v86_v53, %v85_v40  ;;  %v90_v61 = vor.u32 %v89_v54, %v88_v42  ;;  %v93_v62 = vor.u32 %v92_v55, %v91_v44  ;;  %v285_v38 = vadd.s32 1, %v1024_v26 }
  0x4e   :  { %v96_v63 = vor.u32 %v95_v56, %v94_v46  ;;  %v99_v2 = vor.u32 %v98_v58, %v97_v48  ;;  %v1172_v26 = vmov 2  }
  0x4f   :  { %v104_v5 = vsel %vm100_vm1, %v84_v52, %v87_v60  ;;  %v105_v6 = vsel %vm103_vm2, %v93_v62, 2102212464  ;;  %v108_v9 = vsel %vm100_vm1, %v87_v60, %v90_v61  ;;  %v112_v10 = vsel %vm100_vm1, %v90_v61, %v93_v62 }
  0x50   :  { %575 = vperm.xlu1 %1058, %v1291_v50   ;;  %570 = vperm.xlu0 %1057, %v1293_v51   ;;  %v106_v11 = vsel %vm102_vm4, %v90_v61, %v105_v6  ;;  %v109_v12 = vsel %vm103_vm2, %v96_v63, 920167782  ;;  %v113_v16 = vsel %vm103_vm2, %v99_v2, 1326507024  ;;  %vm286_vm6 = vcmp.gt.s32.totalorder %v285_v38, 0 }
  0x51   :  { %v110_v18 = vsel %vm102_vm4, %v93_v62, %v109_v12  ;;  %v114_v19 = vsel %vm102_vm4, %v96_v63, %v113_v16  ;;  %v107_v23 = vsel %vm101_vm3, %v104_v5, %v106_v11  ;;  %v287_v48 = vsel %vm286_vm6, %v285_v38, 0 }
  0x52   :  { %v111_v24 = vsel %vm101_vm3, %v108_v9, %v110_v18  ;;  %v115_v25 = vsel %vm101_vm3, %v112_v10, %v114_v19  ;;  %v123_v37 = vmul.u32 %v116_v49, %v107_v23  ;;  %v289_v52 = vand.u32 31, %v287_v48 }
  0x53   :  { %v1308_v29 = vmul.u32.u64.low %v116_v49, %v115_v25  ;;  %v1309_v32 = vmul.u32.u64.high %v116_v49, %v115_v25, %v1308_v29  ;;  %v1311_v33 = vmul.u32.u64.low %v116_v49, %v111_v24  ;;  %v1312_v35 = vmul.u32.u64.high %v116_v49, %v111_v24, %v1311_v33 }
  0x54   :  { %1060 = vset.pattern.permute.xlu1 %v1171_v22  ;;  %1059 = vset.pattern.permute.xlu0 %v1171_v22  ;;  %v290_v55 = vsub.s32 32, %v289_v52  ;;  %v301_v60 = vshll.u32 %v1168_v45, %v289_v52  ;;  %v1339_v63 = vshrl.u32 %v287_v48, 5  ;;  %v304_v2 = vshll.u32 %v1169_v47, %v289_v52 }
  0x55   :  { %603 = vperm.xlu1 %1060, %v1243_v4   ;;  %599 = vperm.xlu0 %1059, %v1237_v1   ;;  %vm125_vm5 = vc.u32 %v1309_v32, %v1311_v33  ;;  %v126_v36 = vadd.s32 1, %v1312_v35  ;;  %v292_v6 = vshll.u32 %v1165_v39, %v289_v52  ;;  %v295_v9 = vshll.u32 %v1166_v41, %v289_v52 }
  0x56   :  { %v302_v61 = vshrl.u32 %v1169_v47, %v290_v55  ;;  %v305_v5 = vshrl.u32 %v1170_v57, %v290_v55  ;;  %v298_v10 = vshll.u32 %v1167_v43, %v289_v52  ;;  %v293_v11 = vshrl.u32 %v1166_v41, %v290_v55 }
  0x57   :  { %v127_v40 = vsel %vm125_vm5, %v126_v36, %v1312_v35  ;;  %v296_v12 = vshrl.u32 %v1167_v43, %v290_v55  ;;  %v299_v16 = vshrl.u32 %v1168_v45, %v290_v55  ;;  %v282_v57 = vand.u32 8388607, %v275_v59 }
  0x58   :  { %v128_v42 = vadd.s32 %v127_v40, %v123_v37  ;;  %v303_v47 = vor.u32 %v302_v61, %v301_v60  ;;  %v306_v19 = vor.u32 %v305_v5, %v304_v2  ;;  %vm310_vm8 = vcmp.lt.s32.totalorder %v1339_v63, 4 }
  0x59   :  { %607 = vperm.xlu1 %1060, %v1235_v0   ;;  %611 = vperm.xlu0 %1059, %v1241_v3   ;;  %v294_v22 = vor.u32 %v293_v11, %v292_v6  ;;  %v297_v23 = vor.u32 %v296_v12, %v295_v9  ;;  %v300_v24 = vor.u32 %v299_v16, %v298_v10  ;;  %vm307_vm9 = vcmp.lt.s32.totalorder %v1339_v63, 1 }
  0x5a   :  { %v129_v44 = vadd.s32 536870912, %v128_v42  ;;  %vm309_vm10 = vcmp.lt.s32.totalorder %v1339_v63, 3  ;;  %v316_v43 = vsel %vm310_vm8, %v303_v47, 920167782  ;;  %v283_v45 = vor.u32 8388608, %v282_v57 }
  0x5b   :  { %v320_v25 = vsel %vm310_vm8, %v306_v19, 1326507024  ;;  %v124_v29 = vadd.s32 %v1311_v33, %v1309_v32  ;;  %vm308_vm11 = vcmp.lt.s32.totalorder %v1339_v63, 2  ;;  %v315_v35 = vsel %vm307_vm9, %v294_v22, %v297_v23 }
  0x5c   :  { %v1323_v46 = vshrl.u32 %v129_v44, 30  ;;  %v317_v37 = vsel %vm309_vm10, %v300_v24, %v316_v43  ;;  %v319_v40 = vsel %vm307_vm9, %v297_v23, %v300_v24  ;;  %v323_v44 = vshll.u32 %v283_v45, 8 }
  0x5d   :  { %615 = vperm.xlu1 %1060, %v1249_v8   ;;  %619 = vperm.xlu0 %1059, %v1247_v7   ;;  %v318_v32 = vsel %vm308_vm11, %v315_v35, %v317_v37  ;;  %vm160_vm2 = vweird.f32 %v1257_v15  ;;  %vm277_vm4 = vcmp.lt.s32.totalorder %v1275_v30, 0  ;;  %vm1523_vm5 = vcmp.le.f32.partialorder %v275_v59, 0.7853982 }
  0x5e   :  { %v131_v49 = vshll.u32 %v1323_v46, 30  ;;  %v154_v17 = vsub.s32 4, %v1323_v46 }
  0x60   :  { %v1328_v53 = vsub.s32 %v128_v42, %v131_v49  ;;  %v321_v42 = vsel %vm309_vm10, %v303_v47, %v320_v25  ;;  %v155_v43 = vsel %vm70_vm13, %v154_v17, %v1323_v46 }
  0x61   :  { %623 = vperm.xlu1 %1060, %v1255_v14   ;;  %627 = vperm.xlu0 %1059, %v1253_v13   ;;  %v322_v33 = vsel %vm308_vm11, %v319_v40, %v321_v42  ;;  %v1441_v25 = vsel %vm1415_vm14, 0, %v155_v43  ;;  %v578_v40 = vlaneseq }
  0x62   :  { %v134_v54 = vsub.s32 0, %v1328_v53  ;;  %v1387_v60 = vmul.u32.u64.low %v323_v44, %v322_v33  ;;  %v1388_v61 = vmul.u32.u64.high %v323_v44, %v322_v33, %v1387_v60  ;;  %v161_v46 = vand.u32 3, %v1441_v25 }
  0x63   :  { %v579_v33 = vshrl.u32 %v578_v40, 7 }
  0x64   :  { %v1017_v56 = vmin.u32 %v134_v54, %v1328_v53  ;;  %vm163_vm15 = vcmp.eq.s32.totalorder %v161_v46, 0  ;;  %vm166_vm0 = vcmp.eq.s32.totalorder %v161_v46, 2  ;;  %vm162_vm1 = vcmp.lt.s32.totalorder %v161_v46, 2 }
  0x65   :  { %631 = vperm.xlu1 %1060, %v1265_v21   ;;  %635 = vperm.xlu0 %1059, %v1263_v20  }
  0x66   :  { %v136_v58 = vclz %v1017_v56  ;;  %v1382_v54 = vmul.u32.u64.low %v323_v44, %v318_v32  ;;  %v1383_v56 = vmul.u32.u64.high %v323_v44, %v318_v32, %v1382_v54 }
  0x68   :  { %v1018_v62 = vadd.s32 4294967294, %v136_v58  ;;  %v291_v58 = vshrl.u32 %v1165_v39, %v290_v55  ;;  %v333_v10 = vadd.s32 1, %v1383_v56  ;;  %vm332_vm12 = vc.u32 %v1388_v61, %v1382_v54 }
  0x69   :  { %639 = vperm.xlu1 %1060, %v1273_v28   ;;  %643 = vperm.xlu0 %1059, %v1271_v27  }
  0x6a   :  { %vm1019_vm7 = vcmp.lt.s32.totalorder %v1018_v62, 0  ;;  %v311_v5 = vsel %vm307_vm9, %v291_v58, %v294_v22  ;;  %v334_v16 = vsel %vm332_vm12, %v333_v10, %v1383_v56  ;;  %v1173_v22 = vmov 3  }
  0x6b   :  { %v139_v18 = vsel %vm1019_vm7, 0, %v1018_v62  ;;  %v312_v62 = vsel %vm310_vm8, %v300_v24, 2102212464  ;;  %vm367_vm9 = vweird.f32 %v1275_v30 }
  0x6c   :  { %v144_v41 = vsub.s32 4294967266, %v139_v18  ;;  %v140_v36 = vsub.s32 32, %v139_v18  ;;  %v141_v48 = vshll.u32 %v1328_v53, %v139_v18  ;;  %v313_v6 = vsel %vm309_vm10, %v297_v23, %v312_v62 }
  0x6d   :  { %647 = vperm.xlu1 %1060, %v1281_v34   ;;  %651 = vperm.xlu0 %1059, %v1277_v31   ;;  %v314_v9 = vsel %vm308_vm11, %v311_v5, %v313_v6 }
  0x6e   :  { %v145_v38 = vadd.s32 127, %v144_v41  ;;  %v142_v49 = vshrl.u32 %v124_v29, %v140_v36  ;;  %v330_v12 = vmul.u32 %v323_v44, %v314_v9 }
  0x70   :  { %v146_v52 = vshll.u32 %v145_v38, 23  ;;  %v143_v2 = vor.u32 %v142_v49, %v141_v48  ;;  %v335_v63 = vadd.s32 %v334_v16, %v330_v12  ;;  %v331_v12 = vadd.s32 %v1382_v54, %v1388_v61 }
  0x71   :  { %655 = vperm.xlu1 %1060, %v1293_v51   ;;  %659 = vperm.xlu0 %1059, %v1291_v50  }
  0x72   :  { %v147_v53 = vor.u32 4788187, %v146_v52  ;;  %v150_v55 = vcvt.s32.f32 %v143_v2  ;;  %v336_v19 = vadd.s32 536870912, %v335_v63  ;;  %v1467_v52 = vsub.s32 0, %v579_v33 }
  0x73   :  { %v1174_v2 = vmov 4  }
  0x74   :  { %v148_v39 = vand.u32 2147483647, %v147_v53  ;;  %v1426_v24 = vshrl.u32 %v336_v19, 30 }
  0x75   :  { %1061 = vset.pattern.permute.xlu1 %v1172_v26  ;;  %1062 = vset.pattern.permute.xlu0 %v1172_v26 }
  0x76   :  { %679 = vperm.xlu1 %1061, %v1237_v1   ;;  %683 = vperm.xlu0 %1062, %v1243_v4   ;;  %v151_v11 = vmul.f32 %v150_v55, %v148_v39  ;;  %v338_v41 = vshll.u32 %v1426_v24, 30 }
  0x78   :  { %v152_v47 = vxor.u32 2147483648, %v151_v11  ;;  %v1437_v45 = vsub.s32 %v335_v63, %v338_v41 }
  0x7a   :  { %687 = vperm.xlu1 %1061, %v1235_v0   ;;  %695 = vperm.xlu0 %1062, %v1249_v8   ;;  %v153_v57 = vsel %vm70_vm13, %v152_v47, %v151_v11  ;;  %v341_v29 = vsub.s32 0, %v1437_v45 }
  0x7b   :  { %v156_v23 = vsel %vm1415_vm14, %v1257_v15, %v153_v57 }
  0x7c   :  { %1067 = vcosq.f32 %v156_v23  ;;  %v1025_v38 = vmin.u32 %v341_v29, %v1437_v45 }
  0x7d   :  { %1069 = vsinq.f32 %v156_v23 }
  0x7e   :  { %691 = vperm.xlu1 %1061, %v1241_v3   ;;  %703 = vperm.xlu0 %1062, %v1255_v14   ;;  %v343_v32 = vclz %v1025_v38 }
  0x80   :  { %v1026_v49 = vadd.s32 4294967294, %v343_v32 }
  0x82   :  { %699 = vperm.xlu1 %1061, %v1247_v7   ;;  %711 = vperm.xlu0 %1062, %v1265_v21   ;;  %vm1027_vm3 = vcmp.lt.s32.totalorder %v1026_v49, 0 }
  0x83   :  { %v346_v60 = vsel %vm1027_vm3, 0, %v1026_v49 }
  0x84   :  { %v351_v39 = vsub.s32 4294967266, %v346_v60  ;;  %v347_v16 = vsub.s32 32, %v346_v60 }
  0x86   :  { %707 = vperm.xlu1 %1061, %v1253_v13   ;;  %719 = vperm.xlu0 %1062, %v1273_v28   ;;  %v1443_v26 = vpop.eup %1067  ;;  %v352_v47 = vadd.s32 127, %v351_v39  ;;  %v349_v19 = vshrl.u32 %v331_v12, %v347_v16  ;;  %v361_v39 = vsub.s32 4, %v1426_v24 }
  0x87   :  { %v1448_v35 = vpop.eup %1069  ;;  %v167_v36 = vxor.u32 2147483648, %v1443_v26 }
  0x88   :  { %v164_v37 = vxor.u32 2147483648, %v1448_v35 }
  0x89   :  { %v168_v44 = vsel %vm166_vm0, %v167_v36, %v1448_v35 }
  0x8a   :  { %715 = vperm.xlu1 %1061, %v1263_v20   ;;  %727 = vperm.xlu0 %1062, %v1281_v34   ;;  %v165_v42 = vsel %vm163_vm15, %v1443_v26, %v164_v37 }
  0x8b   :  { %v169_v48 = vsel %vm162_vm1, %v165_v42, %v168_v44 }
  0x8c   :  { %v170_v56 = vsel %vm160_vm2, nan, %v169_v48 }
  0x8d   :  { %v1474_v58 = vrot.slane %v170_v56, %v1467_v52 }
  0x8e   :  { %723 = vperm.xlu1 %1061, %v1271_v27   ;;  %735 = vperm.xlu0 %1062, %v1293_v51  }
  0x92   :  { %731 = vperm.xlu1 %1061, %v1277_v31   ;;  %1063 = vset.pattern.permute.xlu0 %v1173_v22 }
  0x93   :  { %779 = vperm.xlu0 %1063, %v1237_v1  }
  0x96   :  { %739 = vperm.xlu1 %1061, %v1291_v50  }
  0x97   :  { %791 = vperm.xlu0 %1063, %v1241_v3  }
  0x9a   :  { %1064 = vset.pattern.permute.xlu1 %v1173_v22  ;;  %v353_v22 = vshll.u32 %v352_v47, 23 }
  0x9b   :  { %783 = vperm.xlu1 %1064, %v1243_v4   ;;  %799 = vperm.xlu0 %1063, %v1247_v7  }
  0x9c   :  { %v354_v43 = vor.u32 4788187, %v353_v22 }
  0x9e   :  { %v355_v46 = vand.u32 2147483647, %v354_v43 }
  0x9f   :  { %787 = vperm.xlu1 %1064, %v1235_v0   ;;  %807 = vperm.xlu0 %1063, %v1253_v13  }
  0xa3   :  { %795 = vperm.xlu1 %1064, %v1249_v8   ;;  %815 = vperm.xlu0 %1063, %v1263_v20  }
  0xa7   :  { %803 = vperm.xlu1 %1064, %v1255_v14   ;;  %823 = vperm.xlu0 %1063, %v1271_v27  }
  0xab   :  { %811 = vperm.xlu1 %1064, %v1265_v21   ;;  %831 = vperm.xlu0 %1063, %v1277_v31  }
  0xaf   :  { %819 = vperm.xlu1 %1064, %v1273_v28   ;;  %839 = vperm.xlu0 %1063, %v1291_v50  }
  0xb3   :  { %v511_v62 = vpop.permute.xlu1 %510  ;;  %827 = vperm.xlu1 %1064, %v1281_v34   ;;  %1066 = vset.pattern.permute.xlu0 %v1174_v2  ;;  %v501_v53 = vpop.permute.xlu0 %500 }
  0xb4   :  { %v1478_v5 = vmul.f32 %v1474_v58, %v511_v62  ;;  %v1481_v6 = vmul.f32 %v1474_v58, %v501_v53  ;;  %883 = vperm.xlu0 %1066, %v1243_v4  }
  0xb7   :  { %v516_v55 = vpop.permute.xlu1 %515  ;;  %835 = vperm.xlu1 %1064, %v1293_v51   ;;  %v506_v9 = vpop.permute.xlu0 %505 }
  0xb8   :  { %v1486_v10 = vmul.f32 %v1474_v58, %v516_v55  ;;  %v583_v11 = vmul.f32 %v1474_v58, %v506_v9  ;;  %895 = vperm.xlu0 %1066, %v1249_v8   ;;  %v348_v8 = vshll.u32 %v1437_v45, %v346_v60 }
  0xba   :  { %v350_v41 = vor.u32 %v349_v19, %v348_v8 }
  0xbb   :  { %v526_v63 = vpop.permute.xlu1 %525  ;;  %1065 = vset.pattern.permute.xlu1 %v1174_v2  ;;  %v521_v4 = vpop.permute.xlu0 %520 }
  0xbc   :  { %v1493_v18 = vmul.f32 %v1474_v58, %v526_v63  ;;  %v1496_v57 = vmul.f32 %v1474_v58, %v521_v4  ;;  %879 = vperm.xlu1 %1065, %v1237_v1   ;;  %903 = vperm.xlu0 %1066, %v1255_v14   ;;  %v357_v38 = vcvt.s32.f32 %v350_v41 }
  0xbe   :  { %v358_v44 = vmul.f32 %v357_v38, %v355_v46 }
  0xbf   :  { %v536_v54 = vpop.permute.xlu1 %535  ;;  %v531_v61 = vpop.permute.xlu0 %530 }
  0xc0   :  { %v589_v23 = vmul.f32 %v1474_v58, %v536_v54  ;;  %v588_v17 = vmul.f32 %v1474_v58, %v531_v61  ;;  %887 = vperm.xlu1 %1065, %v1235_v0   ;;  %911 = vperm.xlu0 %1066, %v1265_v21  }
  0xc3   :  { %v546_v29 = vpop.permute.xlu1 %545  ;;  %v541_v1 = vpop.permute.xlu0 %540 }
  0xc4   :  { %v591_v14 = vmul.f32 %v1474_v58, %v546_v29  ;;  %v590_v45 = vmul.f32 %v1474_v58, %v541_v1  ;;  %891 = vperm.xlu1 %1065, %v1241_v3   ;;  %919 = vperm.xlu0 %1066, %v1273_v28   ;;  %v359_v28 = vxor.u32 2147483648, %v358_v44 }
  0xc7   :  { %v556_v40 = vpop.permute.xlu1 %555  ;;  %v551_v42 = vpop.permute.xlu0 %550 }
  0xc8   :  { %v593_v0 = vmul.f32 %v1474_v58, %v556_v40  ;;  %v592_v21 = vmul.f32 %v1474_v58, %v551_v42  ;;  %899 = vperm.xlu1 %1065, %v1247_v7   ;;  %927 = vperm.xlu0 %1066, %v1281_v34  }
  0xcb   :  { %v566_v32 = vpop.permute.xlu1 %565  ;;  %v561_v33 = vpop.permute.xlu0 %560 }
  0xcc   :  { %v595_v48 = vmul.f32 %v1474_v58, %v566_v32  ;;  %v594_v3 = vmul.f32 %v1474_v58, %v561_v33  ;;  %907 = vperm.xlu1 %1065, %v1253_v13   ;;  %935 = vperm.xlu0 %1066, %v1293_v51   ;;  %v360_v13 = vsel %vm277_vm4, %v359_v28, %v358_v44 }
  0xcd   :  { %v363_v2 = vsel %vm1523_vm5, %v1275_v30, %v360_v13  ;;  %v264_v13 = vadd.s32 3, %v1441_v25 }
  0xce   :  { %1071 = vcosq.f32 %v363_v2 }
  0xcf   :  { %v576_v49 = vpop.permute.xlu1 %575  ;;  %v571_v56 = vpop.permute.xlu0 %570  ;;  %1073 = vsinq.f32 %v363_v2 }
  0xd0   :  { %v597_v7 = vmul.f32 %v1474_v58, %v576_v49  ;;  %v596_v34 = vmul.f32 %v1474_v58, %v571_v56  ;;  %915 = vperm.xlu1 %1065, %v1263_v20  }
  0xd4   :  { %v604_v51 = vpop.permute.xlu1 %603  ;;  %923 = vperm.xlu1 %1065, %v1271_v27   ;;  %v600_v62 = vpop.permute.xlu0 %599 }
  0xd5   :  { %v1533_v58 = vadd.f32 %v604_v51, %v583_v11  ;;  %v662_v20 = vadd.f32 %v600_v62, %v1481_v6  ;;  %v362_v6 = vsel %vm277_vm4, %v361_v39, %v1426_v24 }
  0xd6   :  { %v1550_v16 = vsel %vm1523_vm5, 0, %v362_v6 }
  0xd7   :  { %v368_v24 = vand.u32 3, %v1550_v16 }
  0xd8   :  { %v608_v59 = vpop.permute.xlu1 %607  ;;  %931 = vperm.xlu1 %1065, %v1277_v31   ;;  %v612_v53 = vpop.permute.xlu0 %611 }
  0xd9   :  { %v664_v55 = vadd.f32 %v608_v59, %v1478_v5  ;;  %v665_v27 = vadd.f32 %v612_v53, %v1486_v10  ;;  %v1552_v10 = vpop.eup %1071  ;;  %vm370_vm6 = vcmp.eq.s32.totalorder %v368_v24, 0  ;;  %vm373_vm7 = vcmp.eq.s32.totalorder %v368_v24, 2 }
  0xda   :  { %v1556_v4 = vpop.eup %1073  ;;  %v374_v54 = vxor.u32 2147483648, %v1552_v10  ;;  %vm369_vm8 = vcmp.lt.s32.totalorder %v368_v24, 2 }
  0xdb   :  { %v371_v22 = vxor.u32 2147483648, %v1556_v4 }
  0xdc   :  { %v616_v9 = vpop.permute.xlu1 %615  ;;  %939 = vperm.xlu1 %1065, %v1291_v50   ;;  %v620_v12 = vpop.permute.xlu0 %619  ;;  %v375_v29 = vsel %vm373_vm7, %v374_v54, %v1556_v4 }
  0xdd   :  { %v1545_v11 = vadd.f32 %v616_v9, %v1496_v57  ;;  %v667_v31 = vadd.f32 %v620_v12, %v1493_v18  ;;  %v372_v43 = vsel %vm370_vm6, %v1552_v10, %v371_v22 }
  0xe0   :  { %v624_v5 = vpop.permute.xlu1 %623  ;;  %v628_v47 = vpop.permute.xlu0 %627 }
  0xe1   :  { %v1554_v63 = vadd.f32 %v624_v5, %v588_v17  ;;  %v669_v50 = vadd.f32 %v628_v47, %v589_v23 }
  0xe4   :  { %v632_v8 = vpop.permute.xlu1 %631  ;;  %v636_v57 = vpop.permute.xlu0 %635 }
  0xe5   :  { %v1559_v19 = vadd.f32 %v632_v8, %v590_v45  ;;  %v671_v18 = vadd.f32 %v636_v57, %v591_v14  ;;  %v376_v45 = vsel %vm369_vm8, %v372_v43, %v375_v29 }
  0xe6   :  { %v377_v40 = vsel %vm367_vm9, nan, %v376_v45 }
  0xe7   :  { %v1579_v32 = vrot.slane %v377_v40, %v1467_v52 }
  0xe8   :  { %v640_v61 = vpop.permute.xlu1 %639  ;;  %v644_v41 = vpop.permute.xlu0 %643 }
  0xe9   :  { %v1563_v17 = vadd.f32 %v640_v61, %v592_v21  ;;  %v673_v23 = vadd.f32 %v644_v41, %v593_v0 }
  0xec   :  { %v648_v1 = vpop.permute.xlu1 %647  ;;  %v652_v14 = vpop.permute.xlu0 %651 }
  0xed   :  { %v1572_v46 = vadd.f32 %v648_v1, %v594_v3  ;;  %v675_v38 = vadd.f32 %v652_v14, %v595_v48 }
  0xf0   :  { %v656_v42 = vpop.permute.xlu1 %655  ;;  %v660_v0 = vpop.permute.xlu0 %659 }
  0xf1   :  { %v1576_v21 = vadd.f32 %v656_v42, %v596_v34  ;;  %v677_v44 = vadd.f32 %v660_v0, %v597_v7  ;;  %v265_v7 = vand.u32 3, %v264_v13 }
  0xf3   :  { %vm267_vm10 = vcmp.eq.s32.totalorder %v265_v7, 0  ;;  %vm270_vm11 = vcmp.eq.s32.totalorder %v265_v7, 2  ;;  %vm266_vm12 = vcmp.lt.s32.totalorder %v265_v7, 2 }
  0xf5   :  { %v680_v33 = vpop.permute.xlu1 %679  ;;  %v684_v28 = vpop.permute.xlu0 %683 }
  0xf6   :  { %v746_v49 = vmul.f32 %v1579_v32, %v680_v33  ;;  %v747_v42 = vmul.f32 %v1579_v32, %v684_v28 }
  0xf8   :  { %v762_v56 = vadd.f32 %v746_v49, %v662_v20  ;;  %v763_v13 = vadd.f32 %v747_v42, %v1533_v58 }
  0xf9   :  { %v688_v60 = vpop.permute.xlu1 %687  ;;  %v696_v3 = vpop.permute.xlu0 %695 }
  0xfa   :  { %v748_v48 = vmul.f32 %v1579_v32, %v688_v60 }
  0xfc   :  { %v764_v51 = vadd.f32 %v748_v48, %v664_v55  ;;  %v269_v55 = vsel %vm267_vm10, %v1443_v26, %v164_v37  ;;  %v471_v48 = vadd.s32 3, %v1550_v16 }
  0xfd   :  { %v692_v62 = vpop.permute.xlu1 %691  ;;  %v704_v2 = vpop.permute.xlu0 %703 }
  0xfe   :  { %v749_v34 = vmul.f32 %v1579_v32, %v692_v62 }
 0x100   :  { %v765_v59 = vadd.f32 %v749_v34, %v665_v27  ;;  %v272_v27 = vsel %vm270_vm11, %v167_v36, %v1448_v35 }
 0x101   :  { %v700_v53 = vpop.permute.xlu1 %699  ;;  %v1585_v39 = vpop.permute.xlu0 %711  ;;  %v273_v8 = vsel %vm266_vm12, %v269_v55, %v272_v27  ;;  %v752_v55 = vmul.f32 %v1579_v32, %v704_v2 }
 0x102   :  { %v751_v9 = vmul.f32 %v1579_v32, %v700_v53  ;;  %v274_v61 = vsel %vm160_vm2, nan, %v273_v8  ;;  %v472_v53 = vand.u32 3, %v471_v48 }
 0x103   :  { %v1606_v29 = vrot.slane %v274_v61, %v1467_v52  ;;  %v768_v2 = vadd.f32 %v752_v55, %v1554_v63  ;;  %v754_v61 = vmul.f32 %v1579_v32, %v1585_v39 }
 0x104   :  { %v767_v20 = vadd.f32 %v751_v9, %v667_v31  ;;  %vm474_vm13 = vcmp.eq.s32.totalorder %v472_v53, 0  ;;  %vm477_vm14 = vcmp.eq.s32.totalorder %v472_v53, 2  ;;  %vm473_vm15 = vcmp.lt.s32.totalorder %v472_v53, 2 }
 0x105   :  { %v708_v12 = vpop.permute.xlu1 %707  ;;  %v1588_v6 = vpop.permute.xlu0 %719 }
 0x106   :  { %v753_v25 = vmul.f32 %v1579_v32, %v708_v12 }
 0x108   :  { %v769_v5 = vadd.f32 %v753_v25, %v669_v50 }
 0x109   :  { %v716_v47 = vpop.permute.xlu1 %715  ;;  %v1597_v24 = vpop.permute.xlu0 %727 }
 0x10a   :  { %v755_v31 = vmul.f32 %v1579_v32, %v716_v47 }
 0x10c   :  { %v771_v57 = vadd.f32 %v755_v31, %v671_v18 }
 0x10d   :  { %v724_v41 = vpop.permute.xlu1 %723  ;;  %v1602_v43 = vpop.permute.xlu0 %735 }
 0x10e   :  { %v757_v37 = vmul.f32 %v1579_v32, %v724_v41  ;;  %v760_v48 = vmul.f32 %v1579_v32, %v1602_v43 }
 0x110   :  { %v773_v26 = vadd.f32 %v757_v37, %v673_v23 }
 0x111   :  { %v732_v35 = vpop.permute.xlu1 %731 }
 0x112   :  { %v759_v36 = vmul.f32 %v1579_v32, %v732_v35  ;;  %v780_v50 = vpop.permute.xlu0 %779 }
 0x113   :  { %v846_v1 = vmul.f32 %v1606_v29, %v780_v50 }
 0x114   :  { %v775_v14 = vadd.f32 %v759_v36, %v675_v38 }
 0x115   :  { %v1610_v18 = vadd.f32 %v846_v1, %v762_v56  ;;  %v740_v15 = vpop.permute.xlu1 %739 }
 0x116   :  { %v761_v45 = vmul.f32 %v1579_v32, %v740_v15  ;;  %v792_v40 = vpop.permute.xlu0 %791 }
 0x117   :  { %v849_v0 = vmul.f32 %v1606_v29, %v792_v40 }
 0x118   :  { %v777_v33 = vadd.f32 %v761_v45, %v677_v44  ;;  %v750_v44 = vmul.f32 %v1579_v32, %v696_v3 }
 0x119   :  { %v1615_v49 = vadd.f32 %v849_v0, %v765_v59 }
 0x11a   :  { %v784_v23 = vpop.permute.xlu1 %783  ;;  %v800_v60 = vpop.permute.xlu0 %799 }
 0x11b   :  { %v847_v38 = vmul.f32 %v1606_v29, %v784_v23  ;;  %v851_v56 = vmul.f32 %v1606_v29, %v800_v60 }
 0x11d   :  { %v863_v62 = vadd.f32 %v847_v38, %v763_v13  ;;  %v1621_v34 = vadd.f32 %v851_v56, %v767_v20  ;;  %v766_v20 = vadd.f32 %v750_v44, %v1545_v11  ;;  %v479_v11 = vsel %vm477_vm14, %v374_v54, %v1556_v4 }
 0x11e   :  { %v788_v7 = vpop.permute.xlu1 %787  ;;  %v808_v28 = vpop.permute.xlu0 %807 }
 0x11f   :  { %v848_v59 = vmul.f32 %v1606_v29, %v788_v7  ;;  %v853_v9 = vmul.f32 %v1606_v29, %v808_v28 }
 0x121   :  { %v1626_v12 = vadd.f32 %v848_v59, %v764_v51  ;;  %v1628_v16 = vadd.f32 %v853_v9, %v769_v5  ;;  %v476_v5 = vsel %vm474_vm13, %v1552_v10, %v371_v22  ;;  %v770_v22 = vadd.f32 %v754_v61, %v1559_v19 }
 0x122   :  { %v796_v58 = vpop.permute.xlu1 %795  ;;  %v816_v25 = vpop.permute.xlu0 %815  ;;  %v480_v1 = vsel %vm473_vm15, %v476_v5, %v479_v11  ;;  %v756_v10 = vmul.f32 %v1579_v32, %v1588_v6  ;;  %v758_v19 = vmul.f32 %v1579_v32, %v1597_v24 }
 0x123   :  { %v850_v27 = vmul.f32 %v1606_v29, %v796_v58  ;;  %v855_v3 = vmul.f32 %v1606_v29, %v816_v25  ;;  %v481_v15 = vsel %vm367_vm9, nan, %v480_v1 }
 0x124   :  { %v772_v40 = vadd.f32 %v756_v10, %v1563_v17  ;;  %v1664_v0 = vrot.slane %v481_v15, %v1467_v52  ;;  %v774_v30 = vadd.f32 %v758_v19, %v1572_v46  ;;  %v776_v52 = vadd.f32 %v760_v48, %v1576_v21 }
 0x125   :  { %v866_v47 = vadd.f32 %v850_v27, %v766_v20  ;;  %v1634_v8 = vadd.f32 %v855_v3, %v771_v57 }
 0x126   :  { %v804_v31 = vpop.permute.xlu1 %803  ;;  %v824_v51 = vpop.permute.xlu0 %823 }
 0x127   :  { %v852_v41 = vmul.f32 %v1606_v29, %v804_v31  ;;  %v857_v57 = vmul.f32 %v1606_v29, %v824_v51 }
 0x129   :  { %v868_v37 = vadd.f32 %v852_v41, %v768_v2  ;;  %v1647_v35 = vadd.f32 %v857_v57, %v773_v26 }
 0x12a   :  { %v812_v36 = vpop.permute.xlu1 %811  ;;  %v832_v50 = vpop.permute.xlu0 %831 }
 0x12b   :  { %v854_v63 = vmul.f32 %v1606_v29, %v812_v36  ;;  %v859_v4 = vmul.f32 %v1606_v29, %v832_v50 }
 0x12d   :  { %v870_v54 = vadd.f32 %v854_v63, %v770_v22  ;;  %v1654_v39 = vadd.f32 %v859_v4, %v775_v14 }
 0x12e   :  { %v820_v26 = vpop.permute.xlu1 %819  ;;  %v840_v45 = vpop.permute.xlu0 %839 }
 0x12f   :  { %v856_v42 = vmul.f32 %v1606_v29, %v820_v26  ;;  %v861_v6 = vmul.f32 %v1606_v29, %v840_v45 }
 0x131   :  { %v872_v23 = vadd.f32 %v856_v42, %v772_v40  ;;  %v1666_v14 = vadd.f32 %v861_v6, %v777_v33 }
 0x132   :  { %v828_v60 = vpop.permute.xlu1 %827 }
 0x133   :  { %v858_v17 = vmul.f32 %v1606_v29, %v828_v60  ;;  %v884_v13 = vpop.permute.xlu0 %883 }
 0x134   :  { %v947_v24 = vmul.f32 %v1664_v0, %v884_v13 }
 0x135   :  { %v874_v38 = vadd.f32 %v858_v17, %v774_v30 }
 0x136   :  { %v963_v56 = vadd.f32 %v947_v24, %v863_v62  ;;  %v836_v7 = vpop.permute.xlu1 %835 }
 0x137   :  { %v860_v28 = vmul.f32 %v1606_v29, %v836_v7  ;;  %v896_v33 = vpop.permute.xlu0 %895 }
 0x138   :  { %979 = vst [vmem:[#allocation9 + $0x8] sm:$0xff] %v963_v56  ;;  %v950_v53 = vmul.f32 %v1664_v0, %v896_v33 }
 0x139   :  { %v876_v46 = vadd.f32 %v860_v28, %v776_v52 }
 0x13a   :  { %v966_v44 = vadd.f32 %v950_v53, %v866_v47 }
 0x13b   :  { %v880_v59 = vpop.permute.xlu1 %879  ;;  %v904_v32 = vpop.permute.xlu0 %903 }
 0x13c   :  { %982 = vst [vmem:[#allocation9 + $0x20] sm:$0xff] %v966_v44  ;;  %v946_v43 = vmul.f32 %v1664_v0, %v880_v59  ;;  %v952_v9 = vmul.f32 %v1664_v0, %v904_v32 }
 0x13e   :  { %v962_v62 = vadd.f32 %v946_v43, %v1610_v18  ;;  %v968_v58 = vadd.f32 %v952_v9, %v868_v37 }
 0x13f   :  { %v888_v25 = vpop.permute.xlu1 %887  ;;  %v912_v21 = vpop.permute.xlu0 %911 }
 0x140   :  { %978 = vst [vmem:[#allocation9] sm:$0xff] %v962_v62  ;;  %984 = vst [vmem:[#allocation9 + $0x30] sm:$0xff] %v968_v58  ;;  %v948_v29 = vmul.f32 %v1664_v0, %v888_v25  ;;  %v954_v20 = vmul.f32 %v1664_v0, %v912_v21 }
 0x142   :  { %v964_v55 = vadd.f32 %v948_v29, %v1626_v12  ;;  %v970_v27 = vadd.f32 %v954_v20, %v870_v54 }
 0x143   :  { %v892_v3 = vpop.permute.xlu1 %891  ;;  %v920_v47 = vpop.permute.xlu0 %919 }
 0x144   :  { %980 = vst [vmem:[#allocation9 + $0x10] sm:$0xff] %v964_v55  ;;  %986 = vst [vmem:[#allocation9 + $0x40] sm:$0xff] %v970_v27  ;;  %v949_v31 = vmul.f32 %v1664_v0, %v892_v3  ;;  %v956_v18 = vmul.f32 %v1664_v0, %v920_v47 }
 0x146   :  { %v965_v51 = vadd.f32 %v949_v31, %v1615_v49  ;;  %v972_v5 = vadd.f32 %v956_v18, %v872_v23 }
 0x147   :  { %v900_v11 = vpop.permute.xlu1 %899  ;;  %v928_v2 = vpop.permute.xlu0 %927 }
 0x148   :  { %981 = vst [vmem:[#allocation9 + $0x18] sm:$0xff] %v965_v51  ;;  %988 = vst [vmem:[#allocation9 + $0x50] sm:$0xff] %v972_v5  ;;  %v951_v61 = vmul.f32 %v1664_v0, %v900_v11  ;;  %v958_v12 = vmul.f32 %v1664_v0, %v928_v2 }
 0x14a   :  { %v967_v41 = vadd.f32 %v951_v61, %v1621_v34  ;;  %v974_v57 = vadd.f32 %v958_v12, %v874_v38 }
 0x14b   :  { %v908_v37 = vpop.permute.xlu1 %907  ;;  %v936_v36 = vpop.permute.xlu0 %935 }
 0x14c   :  { %983 = vst [vmem:[#allocation9 + $0x28] sm:$0xff] %v967_v41  ;;  %990 = vst [vmem:[#allocation9 + $0x60] sm:$0xff] %v974_v57  ;;  %v953_v50 = vmul.f32 %v1664_v0, %v908_v37  ;;  %v960_v49 = vmul.f32 %v1664_v0, %v936_v36 }
 0x14e   :  { %v969_v1 = vadd.f32 %v953_v50, %v1628_v16  ;;  %v976_v22 = vadd.f32 %v960_v49, %v876_v46 }
 0x14f   :  { %v916_v10 = vpop.permute.xlu1 %915 }
 0x150   :  { %985 = vst [vmem:[#allocation9 + $0x38] sm:$0xff] %v969_v1  ;;  %992 = vst [vmem:[#allocation9 + $0x70] sm:$0xff] %v976_v22  ;;  %v955_v63 = vmul.f32 %v1664_v0, %v916_v10 }
 0x152   :  { %v971_v4 = vadd.f32 %v955_v63, %v1634_v8 }
 0x153   :  { %v924_v34 = vpop.permute.xlu1 %923 }
 0x154   :  { %987 = vst [vmem:[#allocation9 + $0x48] sm:$0xff] %v971_v4  ;;  %v957_v54 = vmul.f32 %v1664_v0, %v924_v34 }
 0x156   :  { %v973_v15 = vadd.f32 %v957_v54, %v1647_v35 }
 0x157   :  { %v932_v26 = vpop.permute.xlu1 %931 }
 0x158   :  { %989 = vst [vmem:[#allocation9 + $0x58] sm:$0xff] %v973_v15  ;;  %v959_v45 = vmul.f32 %v1664_v0, %v932_v26 }
 0x15a   :  { %v975_v16 = vadd.f32 %v959_v45, %v1654_v39 }
 0x15b   :  { %v940_v40 = vpop.permute.xlu1 %939 }
 0x15c   :  { %991 = vst [vmem:[#allocation9 + $0x68] sm:$0xff] %v975_v16  ;;  %v961_v19 = vmul.f32 %v1664_v0, %v940_v40 }
 0x15e   :  { %v977_v8 = vadd.f32 %v961_v19, %v1666_v14 }
 0x160   :  { %993 = vst [vmem:[#allocation9 + $0x78] sm:$0xff] %v977_v8 }
 0x161   :  { %1140 = shalt.err (!%p1137_p9)
}
 0x162   :  { %s1141_s27 = scalar_lea.hbm %s1717_s3, 2048 }
 0x163   :  { %p1142_p10 = scmp.ne.s32.totalorder %s1717_s3, %s1141_s27  ;;  %p1145_p11 = scmp.lt.u32.totalorder %s1141_s27, %s1717_s3 }
 0x165   :  { %p1147_p12 = pnand %p1145_p11, %p1142_p10 }
 0x167   :  { %1150 = shalt.err (!%p1147_p12)
}
 0x168   :  { %1005 = dma.vmem_to_hbm [thread:$0]  %s1000_s23, 2048, %s1717_s3, [#allocation4], %s1162_s1, %s1162_s1, %s1163_s16  }
 0x169   :  { %1157 = dma.done.wait [#allocation4], 2048  }
 0x16a   :  { %1158 = vsyncadd [#allocation4], 4294965248 }
 0x16b   :  { %1009 = vsyncpa [#allocation3], 1 }
 0x16c   :  { %1010 = vsyncpa [#allocation8], 1 }
 0x16d   :  { %1011 = vsyncpa [#allocation4], 1 }
 0x16e   :  { %1012 = vsyncpa [#allocation5], 1 }

</bundles_post_ra>
